<compile_context>
chip_gen: v7x
topology: tpu7x:2x2x1
jax: 0.10.0
libtpu: 0.0.40
codegen_flags: <defaults>
</compile_context>

<pallas_src>
import functools
import math

import jax
import jax.numpy as jnp
from jax.experimental import pallas as pl
from jax.experimental.pallas import tpu as pltpu


def _round_up(x, m):
    return ((x + m - 1) // m) * m


def _pad2d(x, rows, cols):
    r, c = x.shape
    return jnp.zeros((rows, cols), x.dtype).at[:r, :c].set(x)


# ---------------------------------------------------------------------------
# Pallas kernels
# ---------------------------------------------------------------------------
def _mlp_heads_kernel(x_ref, wm_ref, bm_ref, wr_ref, br_ref, o_ref):
    # share     = relu(x @ Wm + bm)                         (shared mlp head)
    # u2e_r_new = relu([x | share] @ Wr + br)               (single K=2*Dp MXU push;
    #                                                        lane-aligned concat in VMEM)
    x = x_ref[...]
    share = jnp.maximum(
        jnp.dot(x, wm_ref[...], preferred_element_type=jnp.float32) + bm_ref[...], 0.0)
    xs = jnp.concatenate([x, share], axis=1)          # (tm, 2*Dp), 128-aligned lanes
    y = jnp.dot(xs, wr_ref[...], preferred_element_type=jnp.float32) + br_ref[...]
    o_ref[...] = jnp.maximum(y, 0.0)


def _graph_matmul_kernel(g_ref, e_ref, o_ref, acc_ref):
    # One tiled step of y = G @ e (one LightGCN layer): bf16 MXU inputs, f32 accumulation
    # in VMEM scratch, bf16 writeback at the last contraction step (next layer consumes
    # the bf16 output directly -> no external per-layer cast pass).
    k = pl.program_id(1)

    @pl.when(k == 0)
    def _():
        acc_ref[...] = jnp.zeros_like(acc_ref)

    acc_ref[...] += jnp.dot(g_ref[...], e_ref[...], preferred_element_type=jnp.float32)

    @pl.when(k == pl.num_programs(1) - 1)
    def _():
        o_ref[...] = acc_ref[...].astype(o_ref.dtype)


# ---------------------------------------------------------------------------
# pallas_call wrappers
# ---------------------------------------------------------------------------
def mlp_heads(x_pad, wm, bm, wr, br, *, tm):
    # Row-tiled fused MLP head; weights are grid-invariant full blocks (stay VMEM-resident),
    # x / out row tiles stream and double-buffer.
    Mp, Dp = x_pad.shape
    D2 = wr.shape[0]
    return pl.pallas_call(
        _mlp_heads_kernel,
        out_shape=jax.ShapeDtypeStruct((Mp, Dp), jnp.float32),
        grid_spec=pltpu.PrefetchScalarGridSpec(
            num_scalar_prefetch=0,
            grid=(Mp // tm,),
            in_specs=[pl.BlockSpec((tm, Dp), lambda i: (i, 0)),   # x row tiles
                      pl.BlockSpec((Dp, Dp), lambda i: (0, 0)),   # Wm (full)
                      pl.BlockSpec((1, Dp), lambda i: (0, 0)),    # bm
                      pl.BlockSpec((D2, Dp), lambda i: (0, 0)),   # stacked Wr (full)
                      pl.BlockSpec((1, Dp), lambda i: (0, 0))],   # br
            out_specs=pl.BlockSpec((tm, Dp), lambda i: (i, 0))),
        compiler_params=pltpu.CompilerParams(
            dimension_semantics=("parallel",)),
    )(x_pad, wm, bm, wr, br)


def graph_matmul(graph_bf16, e_bf16, *, tm, tk, vmem_limit_bytes):
    # Tiled y = G @ e for one propagation layer.  bf16 in, bf16 out, f32 accumulation.
    Np = graph_bf16.shape[0]
    Dp = e_bf16.shape[1]
    return pl.pallas_call(
        _graph_matmul_kernel,
        out_shape=jax.ShapeDtypeStruct((Np, Dp), jnp.bfloat16),
        grid_spec=pltpu.PrefetchScalarGridSpec(
            num_scalar_prefetch=0,
            grid=(Np // tm, Np // tk),
            # G row-tiles stream; e k-slab cycles.  If profiling on v7x shows exposed
            # DMA at row-tile boundaries, add pipeline_mode=pl.Buffered(3) on the G spec.
            in_specs=[pl.BlockSpec((tm, tk), lambda i, k: (i, k)),
                      pl.BlockSpec((tk, Dp), lambda i, k: (k, 0))],
            out_specs=pl.BlockSpec((tm, Dp), lambda i, k: (i, 0)),
            scratch_shapes=[pltpu.VMEM((tm, Dp), jnp.float32)]),
        compiler_params=pltpu.CompilerParams(
            # row axis parallel -> shards across the 2 TCs on v7x; contraction is arbitrary.
            dimension_semantics=("parallel", "arbitrary"),
            vmem_limit_bytes=vmem_limit_bytes),
    )(graph_bf16, e_bf16)


# ---------------------------------------------------------------------------
# Fused forward (flag == 1) — a single jit containing all pallas_calls
# ---------------------------------------------------------------------------
def _forward_flag1(params, users, items, *, n_users_p1, n_items, n_layers,
                   tm, tk, tm_mlp, vmem_limit_bytes):
    # 1) shared MLP + mlp_r head (u2e_t_new is dead in the flag==1 score -> not computed)
    u2e_r_new_pad = mlp_heads(params["u2e_r_pad"], params["Wm_pad"], params["bm_pad"],
                              params["Wr_pad"], params["br_pad"], tm=tm_mlp)

    # 2) LightGCN propagation on the padded, lane-dense embedding slab
    N = n_users_p1 + n_items
    Np = params["graph_pad"].shape[0]
    Dp = u2e_r_new_pad.shape[1]
    all_emb = jnp.zeros((Np, Dp), jnp.float32)
    all_emb = all_emb.at[:n_users_p1].set(u2e_r_new_pad[:n_users_p1])
    all_emb = all_emb.at[n_users_p1:N].set(params["item_pad"])

    acc = all_emb                                  # layer-sum accumulated in f32 by XLA
    e = all_emb.astype(jnp.bfloat16)               # single cast before the loop
    for _ in range(n_layers):
        e = graph_matmul(params["graph_pad"], e, tm=tm, tk=tk,
                         vmem_limit_bytes=vmem_limit_bytes)   # bf16 in, bf16 out
        acc = acc + e.astype(jnp.float32)
    light_out = acc * (1.0 / float(n_layers + 1))

    # 3) gather + gamma (tiny) — plain jnp inside the jit, not a dedicated kernel
    all_users = light_out[:n_users_p1]
    all_items = light_out[n_users_p1:N]
    users_emb = all_users[users]
    items_emb = all_items[items]
    return jnp.sum(users_emb * items_emb, axis=1)   # padded lanes are exactly zero


# ---------------------------------------------------------------------------
# Model (parameters + forward, flag == 1)
# ---------------------------------------------------------------------------
class LightGCNPallas:
    def __init__(self, key, hidden_size=32, num_users=15, num_items=16, n_layers=3):
        self.h = hidden_size
        self.num_users = num_users
        self.num_items = num_items
        self.n_layers = n_layers
        n_u = num_users + 1
        N = n_u + num_items
        Dp = _round_up(hidden_size, 128)     # lane-dense feature dim
        Np = _round_up(N, 128)               # padded graph size (tileable)
        assert Np % 128 == 0, "graph padding must keep Np a multiple of 128"
        self.n_u, self.N, self.Dp, self.Np = n_u, N, Dp, Np

        ks = jax.random.split(key, 8)
        stdv = 1.0 / math.sqrt(hidden_size)
        uni = lambda k, shp: jax.random.uniform(k, shp, jnp.float32, -stdv, stdv)
        h = hidden_size
        W_mlp_t = uni(ks[0], (h, h))           # mlp:   Linear(h, h)   stored as W.T
        b_mlp = uni(ks[1], (h,))
        W_mlpr_t = uni(ks[2], (2 * h, h))      # mlp_r: Linear(2h, h)  stored as W.T
        b_mlpr = uni(ks[3], (h,))
        # (mlp_t head exists in the torch module but its output never reaches the flag==1 score)

        def xavier(k, shp):
            bound = math.sqrt(6.0 / (shp[0] + shp[1]))
            return jax.random.uniform(k, shp, jnp.float32, -bound, bound)

        u2e_r = xavier(ks[4], (n_u, h))
        embedding_item = xavier(ks[5], (num_items, h))

        # dataset.getSparseGraph(): symmetric-normalized bipartite adjacency, densified here.
        R = (jax.random.uniform(ks[6], (n_u, num_items)) < 0.3).astype(jnp.float32)
        A = jnp.zeros((N, N), jnp.float32)
        A = A.at[:n_u, n_u:].set(R)
        A = A.at[n_u:, :n_u].set(R.T)
        deg = A.sum(axis=1)
        d_inv_sqrt = jnp.where(deg > 0, deg ** -0.5, 0.0)
        graph = d_inv_sqrt[:, None] * A * d_inv_sqrt[None, :]

        # unpadded copies for the pure-JAX reference
        self.ref = dict(W_mlp_t=W_mlp_t, b_mlp=b_mlp, W_mlpr_t=W_mlpr_t, b_mlpr=b_mlpr,
                        u2e_r=u2e_r, embedding_item=embedding_item, graph=graph)

        # --- MLP-head tiling: row axis tiled so large user tables don't blow VMEM ---
        self.tm_mlp = 512 if n_u >= 512 else _round_up(n_u, 8)
        Mp = _round_up(n_u, self.tm_mlp)
        assert Mp % self.tm_mlp == 0

        # Stacked Wr for the single K=2*Dp matmul: rows [0:h) act on x lanes,
        # rows [Dp:Dp+h) act on share lanes (matches the in-kernel [x|share] concat).
        Wr_pad = jnp.zeros((2 * Dp, Dp), jnp.float32)
        Wr_pad = Wr_pad.at[:h, :h].set(W_mlpr_t[:h])
        Wr_pad = Wr_pad.at[Dp:Dp + h, :h].set(W_mlpr_t[h:])

        # lane-dense, zero-padded copies for the Pallas path (zero pad on weights/bias keeps
        # padded output columns exactly zero through ReLU and the propagation).
        self.params = dict(
            u2e_r_pad=_pad2d(u2e_r, Mp, Dp),
            item_pad=_pad2d(embedding_item, num_items, Dp),
            Wm_pad=_pad2d(W_mlp_t, Dp, Dp),
            bm_pad=_pad2d(b_mlp.reshape(1, h), 1, Dp),
            Wr_pad=Wr_pad,
            br_pad=_pad2d(b_mlpr.reshape(1, h), 1, Dp),
            graph_pad=_pad2d(graph, Np, Np).astype(jnp.bfloat16),   # bf16 graph for MXU/HBM
        )

        # --- Propagation tiling: HBM-bound kernel -> biggest tiles that fit, but keep
        #     >= 2 row tiles so the "parallel" axis shards across v7x's 2 TensorCores. ---
        self.tk = next(t for t in (1024, 512, 256, 128) if Np % t == 0)
        self.tm = next((t for t in (1024, 512, 256, 128, 64, 32, 16, 8)
                        if Np % t == 0 and Np // t >= 2), Np)

        # VMEM budget sized from the chosen tiles (double-buffered G/e/out + f32 acc),
        # with headroom, capped at 48 MiB to stay well inside v7x's 64 MiB physical VMEM.
        need = (2 * self.tm * self.tk * 2      # G tiles, bf16, double-buffered
                + 2 * self.tk * Dp * 2         # e k-slab, bf16, double-buffered
                + 2 * self.tm * Dp * 2         # out tile, bf16, double-buffered
                + self.tm * Dp * 4)            # f32 accumulator scratch
        self.vmem_limit = int(min(48 * 1024 * 1024, max(32 * 1024 * 1024, 2 * need)))

        # single jit over the whole forward -> one dispatch, XLA fuses the glue ops
        self._fwd = jax.jit(functools.partial(
            _forward_flag1, n_users_p1=n_u, n_items=num_items,
            n_layers=n_layers, tm=self.tm, tk=self.tk, tm_mlp=self.tm_mlp,
            vmem_limit_bytes=self.vmem_limit))

    def forward_flag1(self, users, items):
        return self._fwd(self.params, users, items)

    # pure-JAX reference (same bf16 rounding points as the Pallas path, f32 accumulation)
    def forward_reference(self, users, items):
        p = self.ref
        hp = jax.lax.Precision.HIGHEST
        x = p["u2e_r"]
        share = jnp.maximum(jnp.dot(x, p["W_mlp_t"], precision=hp) + p["b_mlp"], 0.0)
        u2e_r_new = jnp.maximum(
            jnp.dot(jnp.concatenate([x, share], axis=1), p["W_mlpr_t"], precision=hp)
            + p["b_mlpr"], 0.0)
        all_emb = jnp.concatenate([u2e_r_new, p["embedding_item"]], axis=0)
        g = p["graph"].astype(jnp.bfloat16).astype(jnp.float32)
        e = all_emb
        acc = all_emb
        for _ in range(self.n_layers):
            e = jnp.dot(g, e.astype(jnp.bfloat16).astype(jnp.float32), precision=hp)
            e = e.astype(jnp.bfloat16).astype(jnp.float32)   # kernel emits bf16 per layer
            acc = acc + e
        light_out = acc / (self.n_layers + 1)
        all_users = light_out[:self.n_u]
        all_items = light_out[self.n_u:]
        return jnp.sum(all_users[users] * all_items[items], axis=1)


# ---------------------------------------------------------------------------
if __name__ == "__main__":
    key = jax.random.PRNGKey(0)
    model_key, data_key = jax.random.split(key)

    model = LightGCNPallas(model_key, hidden_size=32, num_users=15,
                           num_items=16, n_layers=3)

    batch = 8
    ku, ki = jax.random.split(data_key)
    users = jax.random.randint(ku, (batch,), 0, model.n_u)
    items = jax.random.randint(ki, (batch,), 0, model.num_items)

    gamma = model.forward_flag1(users, items)
    gamma = jax.block_until_ready(gamma)

    gamma_ref = model.forward_reference(users, items)
    assert gamma.shape == (batch,)
    assert jnp.allclose(gamma, gamma_ref, atol=1e-3, rtol=1e-3), (gamma, gamma_ref)

    print("KERNEL_OK")
</pallas_src>

<mosaic_0001>
module attributes {stable_mosaic.version = 11 : i64} {
  func.func @_mlp_heads_kernel(%arg0: i32, %arg1: memref<16x128xf32, #tpu.memory_space<vmem>>, %arg2: memref<128x128xf32, #tpu.memory_space<vmem>>, %arg3: memref<1x128xf32, #tpu.memory_space<vmem>>, %arg4: memref<256x128xf32, #tpu.memory_space<vmem>>, %arg5: memref<1x128xf32, #tpu.memory_space<vmem>>, %arg6: memref<16x128xf32, #tpu.memory_space<vmem>>) attributes {dimension_semantics = [#tpu.dimension_semantics<parallel>], iteration_bounds = array<i64: 1>, scalar_prefetch = 0 : i64, scratch_operands = 0 : i64, tpu.core_type = #tpu.core_type<tc>, window_params = [{transform_indices = @transform_0, window_bounds = array<i64: 16, 128>}, {pipeline_mode = #tpu.pipeline_mode<synchronous>, transform_indices = @transform_1, window_bounds = array<i64: 128, 128>}, {pipeline_mode = #tpu.pipeline_mode<synchronous>, transform_indices = @transform_2, window_bounds = array<i64: 1, 128>}, {pipeline_mode = #tpu.pipeline_mode<synchronous>, transform_indices = @transform_3, window_bounds = array<i64: 256, 128>}, {pipeline_mode = #tpu.pipeline_mode<synchronous>, transform_indices = @transform_4, window_bounds = array<i64: 1, 128>}, {transform_indices = @transform_5, window_bounds = array<i64: 16, 128>}]} {
    %c0 = arith.constant 0 : index
    %c0_0 = arith.constant 0 : index
    %0 = vector.load %arg1[%c0, %c0_0] : memref<16x128xf32, #tpu.memory_space<vmem>>, vector<16x128xf32>
    %c0_1 = arith.constant 0 : index
    %c0_2 = arith.constant 0 : index
    %1 = vector.load %arg2[%c0_1, %c0_2] : memref<128x128xf32, #tpu.memory_space<vmem>>, vector<128x128xf32>
    %cst = arith.constant dense<0.000000e+00> : vector<16x128xf32>
    %2 = tpu.matmul %0, %1, %cst {dimension_numbers = #tpu.dot_dimension_numbers<[1], [0], [0], [1], [0, 0, 1, 1], [], []>} : vector<16x128xf32>, vector<128x128xf32>, vector<16x128xf32> -> vector<16x128xf32>
    %c0_3 = arith.constant 0 : index
    %c0_4 = arith.constant 0 : index
    %3 = vector.load %arg3[%c0_3, %c0_4] : memref<1x128xf32, #tpu.memory_space<vmem>>, vector<1x128xf32>
    %4 = vector.broadcast %3 : vector<1x128xf32> to vector<16x128xf32>
    %5 = arith.addf %2, %4 : vector<16x128xf32>
    %cst_5 = arith.constant 0.000000e+00 : f32
    %6 = vector.broadcast %cst_5 : f32 to vector<16x128xf32>
    %7 = arith.maximumf %5, %6 : vector<16x128xf32>
    %8 = tpu.concatenate %0, %7 in 1 : vector<16x128xf32>, vector<16x128xf32> -> vector<16x256xf32>
    %c0_6 = arith.constant 0 : index
    %c0_7 = arith.constant 0 : index
    %9 = vector.load %arg4[%c0_6, %c0_7] : memref<256x128xf32, #tpu.memory_space<vmem>>, vector<256x128xf32>
    %cst_8 = arith.constant dense<0.000000e+00> : vector<16x128xf32>
    %10 = tpu.matmul %8, %9, %cst_8 {dimension_numbers = #tpu.dot_dimension_numbers<[1], [0], [0], [1], [0, 0, 1, 1], [], []>} : vector<16x256xf32>, vector<256x128xf32>, vector<16x128xf32> -> vector<16x128xf32>
    %c0_9 = arith.constant 0 : index
    %c0_10 = arith.constant 0 : index
    %11 = vector.load %arg5[%c0_9, %c0_10] : memref<1x128xf32, #tpu.memory_space<vmem>>, vector<1x128xf32>
    %12 = vector.broadcast %11 : vector<1x128xf32> to vector<16x128xf32>
    %13 = arith.addf %10, %12 : vector<16x128xf32>
    %cst_11 = arith.constant 0.000000e+00 : f32
    %14 = vector.broadcast %cst_11 : f32 to vector<16x128xf32>
    %15 = arith.maximumf %13, %14 : vector<16x128xf32>
    %c0_12 = arith.constant 0 : index
    %c0_13 = arith.constant 0 : index
    %16 = vector.load %arg6[%c0_12, %c0_13] : memref<16x128xf32, #tpu.memory_space<vmem>>, vector<16x128xf32>
    tpu.vector_store %arg6[%c0_12, %c0_13], %15 {strides = array<i32>} : memref<16x128xf32, #tpu.memory_space<vmem>>, vector<16x128xf32>,
    return
  }
  func.func @transform_0(%arg0: i32) -> (i32, i32) {
    %c0_i32 = arith.constant 0 : i32
    %c0_i32_0 = arith.constant 0 : i32
    return %arg0, %c0_i32 : i32, i32
  }
  func.func @transform_1(%arg0: i32) -> (i32, i32) {
    %c0_i32 = arith.constant 0 : i32
    %c0_i32_0 = arith.constant 0 : i32
    %c0_i32_1 = arith.constant 0 : i32
    return %c0_i32, %c0_i32_0 : i32, i32
  }
  func.func @transform_2(%arg0: i32) -> (i32, i32) {
    %c0_i32 = arith.constant 0 : i32
    %c0_i32_0 = arith.constant 0 : i32
    %c0_i32_1 = arith.constant 0 : i32
    return %c0_i32, %c0_i32_0 : i32, i32
  }
  func.func @transform_3(%arg0: i32) -> (i32, i32) {
    %c0_i32 = arith.constant 0 : i32
    %c0_i32_0 = arith.constant 0 : i32
    %c0_i32_1 = arith.constant 0 : i32
    return %c0_i32, %c0_i32_0 : i32, i32
  }
  func.func @transform_4(%arg0: i32) -> (i32, i32) {
    %c0_i32 = arith.constant 0 : i32
    %c0_i32_0 = arith.constant 0 : i32
    %c0_i32_1 = arith.constant 0 : i32
    return %c0_i32, %c0_i32_0 : i32, i32
  }
  func.func @transform_5(%arg0: i32) -> (i32, i32) {
    %c0_i32 = arith.constant 0 : i32
    %c0_i32_0 = arith.constant 0 : i32
    return %arg0, %c0_i32 : i32, i32
  }
}

module attributes {stable_mosaic.version = 11 : i64} {
  func.func @_graph_matmul_kernel(%arg0: i32, %arg1: i32, %arg2: memref<64x128xbf16, #tpu.memory_space<vmem>>, %arg3: memref<128x128xbf16, #tpu.memory_space<vmem>>, %arg4: memref<64x128xbf16, #tpu.memory_space<vmem>>, %arg5: memref<64x128xf32, #tpu.memory_space<vmem>>) attributes {dimension_semantics = [#tpu.dimension_semantics<parallel>, #tpu.dimension_semantics<arbitrary>], iteration_bounds = array<i64: 2, 1>, scalar_prefetch = 0 : i64, scratch_operands = 1 : i64, tpu.core_type = #tpu.core_type<tc>, window_params = [{transform_indices = @transform_0, window_bounds = array<i64: 64, 128>}, {transform_indices = @transform_1, window_bounds = array<i64: 128, 128>}, {transform_indices = @transform_2, window_bounds = array<i64: 64, 128>}]} {
    %c0_i32 = arith.constant 0 : i32
    %0 = arith.cmpi eq, %arg1, %c0_i32 : i32
    %1 = arith.extui %0 : i1 to i32
    %c0_i32_0 = arith.constant 0 : i32
    %2 = arith.cmpi ne, %1, %c0_i32_0 : i32
    scf.if %2 {
      %cst_10 = arith.constant 0.000000e+00 : f32
      %12 = vector.broadcast %cst_10 : f32 to vector<64x128xf32>
      %c0_11 = arith.constant 0 : index
      %c0_12 = arith.constant 0 : index
      %13 = vector.load %arg5[%c0_11, %c0_12] : memref<64x128xf32, #tpu.memory_space<vmem>>, vector<64x128xf32>
      tpu.vector_store %arg5[%c0_11, %c0_12], %12 {strides = array<i32>} : memref<64x128xf32, #tpu.memory_space<vmem>>, vector<64x128xf32>,
    } else {
    }
    %c0 = arith.constant 0 : index
    %c0_1 = arith.constant 0 : index
    %3 = vector.load %arg5[%c0, %c0_1] : memref<64x128xf32, #tpu.memory_space<vmem>>, vector<64x128xf32>
    %c0_2 = arith.constant 0 : index
    %c0_3 = arith.constant 0 : index
    %4 = vector.load %arg2[%c0_2, %c0_3] : memref<64x128xbf16, #tpu.memory_space<vmem>>, vector<64x128xbf16>
    %c0_4 = arith.constant 0 : index
    %c0_5 = arith.constant 0 : index
    %5 = vector.load %arg3[%c0_4, %c0_5] : memref<128x128xbf16, #tpu.memory_space<vmem>>, vector<128x128xbf16>
    %cst = arith.constant dense<0.000000e+00> : vector<64x128xf32>
    %6 = tpu.matmul %4, %5, %cst {dimension_numbers = #tpu.dot_dimension_numbers<[1], [0], [0], [1], [0, 0, 1, 1], [], []>} : vector<64x128xbf16>, vector<128x128xbf16>, vector<64x128xf32> -> vector<64x128xf32>
    %7 = arith.addf %3, %6 : vector<64x128xf32>
    %c0_6 = arith.constant 0 : index
    %c0_7 = arith.constant 0 : index
    %8 = vector.load %arg5[%c0_6, %c0_7] : memref<64x128xf32, #tpu.memory_space<vmem>>, vector<64x128xf32>
    tpu.vector_store %arg5[%c0_6, %c0_7], %7 {strides = array<i32>} : memref<64x128xf32, #tpu.memory_space<vmem>>, vector<64x128xf32>,
    %c0_i32_8 = arith.constant 0 : i32
    %9 = arith.cmpi eq, %arg1, %c0_i32_8 : i32
    %10 = arith.extui %9 : i1 to i32
    %c0_i32_9 = arith.constant 0 : i32
    %11 = arith.cmpi ne, %10, %c0_i32_9 : i32
    scf.if %11 {
      %c0_10 = arith.constant 0 : index
      %c0_11 = arith.constant 0 : index
      %12 = vector.load %arg5[%c0_10, %c0_11] : memref<64x128xf32, #tpu.memory_space<vmem>>, vector<64x128xf32>
      %13 = arith.truncf %12 : vector<64x128xf32> to vector<64x128xbf16>
      %c0_12 = arith.constant 0 : index
      %c0_13 = arith.constant 0 : index
      %14 = vector.load %arg4[%c0_12, %c0_13] : memref<64x128xbf16, #tpu.memory_space<vmem>>, vector<64x128xbf16>
      tpu.vector_store %arg4[%c0_12, %c0_13], %13 {strides = array<i32>} : memref<64x128xbf16, #tpu.memory_space<vmem>>, vector<64x128xbf16>,
    } else {
    }
    return
  }
  func.func @transform_0(%arg0: i32, %arg1: i32) -> (i32, i32) {
    %c0_i32 = arith.constant 0 : i32
    return %arg0, %arg1 : i32, i32
  }
  func.func @transform_1(%arg0: i32, %arg1: i32) -> (i32, i32) {
    %c0_i32 = arith.constant 0 : i32
    %c0_i32_0 = arith.constant 0 : i32
    return %arg1, %c0_i32 : i32, i32
  }
  func.func @transform_2(%arg0: i32, %arg1: i32) -> (i32, i32) {
    %c0_i32 = arith.constant 0 : i32
    %c0_i32_0 = arith.constant 0 : i32
    return %arg0, %c0_i32 : i32, i32
  }
}

</mosaic_0001>

<bundles_post_ra>
// kernel: _forward_flag1.5
= control target key start
LH: loop header
LB: loop body
LE: loop exit
PB: predicated region body
PF: predicated region fallthrough
CT: control target
= control target key end

     0   :  { %s714_s9 = smov 0   ;;  %s716_s10 = smov 0   ;;  %s784_s0 = inlined_call_operand.vmem [shape: bf16[128,128], index: 0, kind: input, shape index: {}]   ;;  %s785_s1 = inlined_call_operand.vmem [shape: bf16[128,128], index: 1, kind: input, shape index: {}]   ;;  %s786_s2 = inlined_call_operand.vmem [shape: bf16[128,128], index: 2, kind: output, shape index: {}]  }
   0x1   :  { %s718_s11 = smov 0  }
   0x2 LB: > { %s24_s12 = sadd.s32 1, %s693_s10  ;;  %p529_p0 = scmp.ge.s32.totalorder %s697_s11, 1  ;;  %s697_s11 = sphi %s718_s11, %s12_s11   ;;  %s693_s10 = sphi %s716_s10, %s788_s10   ;;  %s689_s9 = sphi %s714_s9, %s787_s9  }
   0x3   : > { %p26_p1 = scmp.ge.s32.totalorder %s24_s12, 2  ;;  %p141_p2 = scmp.lt.s32.totalorder %s697_s11, 3 }
   0x5   : > { %s790_s12 = smov (%p26_p1, %s24_s12), 0  ;;  %p142_p3 = pnand %p529_p0, %p141_p2 }
   0x6   : > { %v663_v0 = vld [vmem:[%s785_s1] sm:$0xff] (!%p142_p3)   ;;  %s530_s15 = sshll.u32 (!%p142_p3), %s689_s9, 3  ;;  %v664_v1 = vld [vmem:[%s785_s1 + $0x8] sm:$0xff] (!%p142_p3)   ;;  %v665_v2 = vld [vmem:[%s785_s1 + $0x10] sm:$0xff] (!%p142_p3)  }
   0x7   : > { %145 = sbr.rel (%p142_p3) target bundleno = 257 (0x101), region = 28  ;;  %p172_p4 = scmp.lt.s32.totalorder (!%p142_p3), %s530_s15, 15  ;;  %599 = vmatprep.subr.bf16.mxu0 (!%p142_p3), %v663_v0  ;;  %623 = vmatprep.subr.bf16.mxu1 (!%p142_p3), %v663_v0  ;;  %v666_v3 = vld [vmem:[%s785_s1 + $0x18] sm:$0xff] (!%p142_p3)   ;;  %v667_v6 = vld [vmem:[%s785_s1 + $0x20] sm:$0xff] (!%p142_p3)   ;;  %v668_v7 = vld [vmem:[%s785_s1 + $0x28] sm:$0xff] (!%p142_p3)  }
   0x8   : > { %600 = vmatpush3.bf16.msra.mxu0 (!%p142_p3), %v663_v0  ;;  %631 = vmatpush3.bf16.msra.mxu1 (!%p142_p3), %v663_v0  ;;  %v669_v8 = vld [vmem:[%s785_s1 + $0x30] sm:$0xff] (!%p142_p3)   ;;  %v670_v9 = vld [vmem:[%s785_s1 + $0x38] sm:$0xff] (!%p142_p3)  }
   0x9   : > { %601 = vmatprep.subr.bf16.mxu0 (!%p142_p3), %v664_v1  ;;  %624 = vmatprep.subr.bf16.mxu1 (!%p142_p3), %v664_v1 }
   0xc   : > { %602 = vmatpush3.bf16.msra.mxu0 (!%p142_p3), %v664_v1  ;;  %632 = vmatpush3.bf16.msra.mxu1 (!%p142_p3), %v664_v1 }
   0xd   : > { %603 = vmatprep.subr.bf16.mxu0 (!%p142_p3), %v665_v2  ;;  %625 = vmatprep.subr.bf16.mxu1 (!%p142_p3), %v665_v2 }
   0xe   : > { %s792_s15 = smov (!%p172_p4, %s530_s15), 15 }
   0xf   : > { %s531_s20 = sshll.u32 %s792_s15, 2 }
  0x10   : > { %s749_s23 = scalar_lea.vmem %s784_s0, %s531_s20  ;;  %604 = vmatpush3.bf16.msra.mxu0 %v665_v2  ;;  %633 = vmatpush3.bf16.msra.mxu1 %v665_v2  ;;  %s190_s8 = scalar_lea.vmem %s786_s2, %s531_s20 }
  0x11   : > { %v671_v4 = vld [vmem:[%s749_s23] sm:$0xff]   ;;  %v672_v5 = vld [vmem:[%s749_s23 + $0x10] sm:$0xff]   ;;  %605 = vmatprep.subr.bf16.mxu0 %v666_v3  ;;  %626 = vmatprep.subr.bf16.mxu1 %v666_v3  ;;  %v673_v10 = vld [vmem:[%s749_s23 + $0x8] sm:$0xff]  }
  0x12   : > { %615 = vmatprep.mubr.bf16.mxu0 %v671_v4  ;;  %619 = vmatprep.mubr.bf16.mxu1 %v672_v5  ;;  %v674_v11 = vld [vmem:[%s749_s23 + $0x18] sm:$0xff]  }
  0x14   : > { %606 = vmatpush3.bf16.msra.mxu0 %v666_v3  ;;  %634 = vmatpush3.bf16.msra.mxu1 %v666_v3 }
  0x15   : > { %607 = vmatprep.subr.bf16.mxu0 %v667_v6  ;;  %627 = vmatprep.subr.bf16.mxu1 %v667_v6 }
  0x18   : > { %608 = vmatpush3.bf16.msra.mxu0 %v667_v6  ;;  %635 = vmatpush3.bf16.msra.mxu1 %v667_v6 }
  0x19   : > { %609 = vmatprep.subr.bf16.mxu0 %v668_v7  ;;  %628 = vmatprep.subr.bf16.mxu1 %v668_v7 }
  0x1c   : > { %610 = vmatpush3.bf16.msra.mxu0 %v668_v7  ;;  %636 = vmatpush3.bf16.msra.mxu1 %v668_v7 }
  0x1d   : > { %611 = vmatprep.subr.bf16.mxu0 %v669_v8  ;;  %629 = vmatprep.subr.bf16.mxu1 %v669_v8 }
  0x20   : > { %612 = vmatpush3.bf16.msra.mxu0 %v669_v8  ;;  %637 = vmatpush3.bf16.msra.mxu1 %v669_v8 }
  0x21   : > { %613 = vmatprep.subr.bf16.mxu0 %v670_v9  ;;  %630 = vmatprep.subr.bf16.mxu1 %v670_v9 }
  0x24   : > { %614 = vmatpush3.bf16.msra.mxu0 %v670_v9  ;;  %638 = vmatpush3.bf16.msra.mxu1 %v670_v9 }
  0x27   : > { %616 = vmatmul.mubr.bf16.vlgmr.msra.gmra.mrb[0].mxu0 %v673_v10  ;;  %620 = vmatmul.mubr.bf16.vlgmr.msra.gmra.mrb[0].mxu1 %v674_v11 }
  0xfa   : > { %v617_v12 = vpop.f32.mrb[0].mxu0  ;;  %v621_v13 = vpop.f32.mrb[0].mxu1 }
  0xfb   : > { %v343_v14 = vpop.f32.mrb[1].mxu0  ;;  %v359_v15 = vpop.f32.mrb[1].mxu1 }
  0xfc   : > { %v618_v16 = vpop.f32.mrb[2].mxu0  ;;  %v622_v17 = vpop.f32.mrb[2].mxu1 }
  0xfd   : > { %v572_v18 = vpack.c.bf16 %v618_v16, %v617_v12  ;;  %v582_v19 = vpack.c.bf16 %v622_v17, %v621_v13  ;;  %v346_v20 = vpop.f32.mrb[3].mxu0  ;;  %v362_v21 = vpop.f32.mrb[3].mxu1 }
  0xfe   : > { %v567_v22 = vpack.c.bf16 %v346_v20, %v343_v14  ;;  %v577_v23 = vpack.c.bf16 %v362_v21, %v359_v15 }
  0xff   : > { %584 = vst [vmem:[%s190_s8 + $0x8] sm:$0xff] %v572_v18   ;;  %586 = vst [vmem:[%s190_s8 + $0x18] sm:$0xff] %v582_v19  }
 0x100   : > { %568 = vst [vmem:[%s190_s8] sm:$0xff] %v567_v22   ;;  %585 = vst [vmem:[%s190_s8 + $0x10] sm:$0xff] %v577_v23  }
 0x101 PF: > { %s12_s11 = sadd.s32 1, %s697_s11   ;;  %s787_s9 = smov %s693_s10 }
 0x102   : > { %p9_p5 = scmp.ge.s32.totalorder %s12_s11, 4   ;;  %s788_s10 = smov %s790_s12 }
 0x104   :  { %11 = sbr.rel (!%p9_p5) target bundleno = 2 (0x2), region = 69 }

// kernel: _forward_flag1.4
= control target key start
LH: loop header
LB: loop body
LE: loop exit
PB: predicated region body
PF: predicated region fallthrough
CT: control target
= control target key end

     0   :  { %10 = vsyncpa [#allocation3], 0  ;;  %s622_s0 = inlined_call_operand.hbm [shape: f32[16,128], index: 0, kind: input, shape index: {}]   ;;  %s623_s1 = inlined_call_operand.hbm [shape: f32[128,128], index: 1, kind: input, shape index: {}]   ;;  %s624_s2 = inlined_call_operand.vmem [shape: f32[1,128], index: 2, kind: input, shape index: {}]   ;;  %s625_s3 = inlined_call_operand.hbm [shape: f32[256,128], index: 3, kind: input, shape index: {}]   ;;  %s626_s4 = inlined_call_operand.vmem [shape: f32[1,128], index: 4, kind: input, shape index: {}]   ;;  %s627_s5 = inlined_call_operand.vmem [shape: f32[16,128], index: 5, kind: output, shape index: {}]  }
   0x1   :  { %11 = vsyncpa [#allocation5], 0  ;;  %s519_s18 = smov [#allocation4]   ;;  %s520_s20 = smov [#allocation2]  }
   0x2   :  { %s29_s19 = sshll.u32 %s519_s18, 4  ;;  %s17_s21 = sshll.u32 %s520_s20, 4  ;;  %s30_s19 = int_to_ptr.vmem [resolvable:$true] %s29_s19  ;;  %s554_s21 = int_to_ptr.vmem [resolvable:$true] %s17_s21 }
   0x3   :  { %s449_s24 = scalar_lea.hbm %s623_s1, 2048 }
   0x4   :  { %p450_p0 = scmp.ne.s32.totalorder %s623_s1, %s449_s24  ;;  %p453_p1 = scmp.lt.u32.totalorder %s449_s24, %s623_s1 }
   0x6   :  { %p455_p2 = pnand %p453_p1, %p450_p0 }
   0x8   :  { %458 = shalt.err (!%p455_p2)
}
   0x9   :  { %s459_s29 = scalar_lea.vmem %s30_s19, 2048  ;;  %p464_p4 = scmp.lt.s32.totalorder %s30_s19, %s30_s19 }
   0xa   :  { %p460_p3 = scmp.ne.s32.totalorder %s30_s19, %s459_s29  ;;  %p465_p5 = scmp.lt.s32.totalorder %s459_s29, %s459_s29 }
   0xc   :  { %p466_p6 = por %p465_p5, %p464_p4 }
   0xe   :  { %p467_p7 = pnand %p466_p6, %p460_p3 }
  0x10   :  { %470 = shalt.err (!%p467_p7)
}
  0x11   :  { %s521_s30 = smov 128   ;;  %s522_s6 = smov 8  }
  0x12   :  { %35 = dma.hbm_to_vmem [thread:$0]  %s623_s1, 2048, %s30_s19, [#allocation5], %s521_s30, %s521_s30, %s522_s6  }
  0x13   :  { %s471_s11 = scalar_lea.hbm %s622_s0, 256 }
  0x14   :  { %p472_p8 = scmp.ne.s32.totalorder %s622_s0, %s471_s11  ;;  %p475_p9 = scmp.lt.u32.totalorder %s471_s11, %s622_s0 }
  0x16   :  { %p477_p10 = pnand %p475_p9, %p472_p8 }
  0x18   :  { %480 = shalt.err (!%p477_p10)
}
  0x19   :  { %s481_s16 = scalar_lea.vmem %s554_s21, 256  ;;  %p486_p12 = scmp.lt.s32.totalorder %s554_s21, %s554_s21 }
  0x1a   :  { %p482_p11 = scmp.ne.s32.totalorder %s554_s21, %s481_s16  ;;  %p487_p13 = scmp.lt.s32.totalorder %s481_s16, %s481_s16 }
  0x1c   :  { %p488_p0 = por %p487_p13, %p486_p12 }
  0x1e   :  { %p489_p1 = pnand %p488_p0, %p482_p11 }
  0x20   :  { %492 = shalt.err (!%p489_p1)
}
  0x21   :  { %23 = dma.hbm_to_vmem [thread:$0]  %s622_s0, 256, %s554_s21, [#allocation3], %s521_s30, %s521_s30, %s522_s6  }
  0x22   :  { %s523_s18 = smov [#allocation6]   ;;  %s493_s23 = scalar_lea.hbm %s625_s3, 4096 }
  0x23   :  { %s43_s19 = sshll.u32 %s523_s18, 4  ;;  %p494_p2 = scmp.ne.s32.totalorder %s625_s3, %s493_s23  ;;  %s44_s19 = int_to_ptr.vmem [resolvable:$true] %s43_s19 }
  0x24   :  { %p497_p3 = scmp.lt.u32.totalorder %s493_s23, %s625_s3 }
  0x26   :  { %p499_p4 = pnand %p497_p3, %p494_p2 }
  0x28   :  { %502 = shalt.err (!%p499_p4)
}
  0x29   :  { %s503_s28 = scalar_lea.vmem %s44_s19, 4096  ;;  %p508_p6 = scmp.lt.s32.totalorder %s44_s19, %s44_s19 }
  0x2a   :  { %p504_p5 = scmp.ne.s32.totalorder %s44_s19, %s503_s28  ;;  %p509_p7 = scmp.lt.s32.totalorder %s503_s28, %s503_s28 }
  0x2c   :  { %p510_p8 = por %p509_p7, %p508_p6 }
  0x2e   :  { %p511_p9 = pnand %p510_p8, %p504_p5 }
  0x30   :  { %514 = shalt.err (!%p511_p9)
}
  0x31   :  { %49 = dma.hbm_to_vmem [thread:$0]  %s625_s3, 4096, %s44_s19, [#allocation5], %s521_s30, %s521_s30, %s522_s6  }
  0x32   :  { %515 = dma.done.wait [#allocation3], 256  }
  0x33   :  { %516 = vsyncadd [#allocation3], 4294967040 }
  0x34   :  { %517 = dma.done.wait [#allocation5], 6144  }
  0x35   :  { %518 = vsyncadd [#allocation5], 4294961152  ;;  %v63_v0 = vld [vmem:[#allocation4] sm:$0xff]  ;;  %v64_v1 = vld [vmem:[#allocation4 + $0x8] sm:$0xff] }
  0x36   :  { %v65_v2 = vld [vmem:[#allocation4 + $0x10] sm:$0xff]  ;;  %v380_v3 = vpack.c.bf16 %v64_v1, %v63_v0  ;;  %v66_v4 = vld [vmem:[#allocation4 + $0x18] sm:$0xff]  ;;  %v67_v6 = vld [vmem:[#allocation4 + $0x20] sm:$0xff] }
  0x37   :  { %v384_v5 = vpack.c.bf16 %v66_v4, %v65_v2  ;;  %v68_v7 = vld [vmem:[#allocation4 + $0x28] sm:$0xff]  ;;  %v69_v9 = vld [vmem:[#allocation4 + $0x30] sm:$0xff]  ;;  %v70_v10 = vld [vmem:[#allocation4 + $0x38] sm:$0xff] }
  0x38   :  { %381 = vmatprep.subr.bf16.mxu0 %v380_v3  ;;  %v388_v8 = vpack.c.bf16 %v68_v7, %v67_v6  ;;  %v606_v11 = vld [vmem:[#allocation2] sm:$0xff]  ;;  %v179_v12 = vld [vmem:[#allocation6 + $0x80] sm:$0xff]  ;;  %v180_v13 = vld [vmem:[#allocation6 + $0x88] sm:$0xff]  ;;  %v392_v24 = vpack.c.bf16 %v70_v10, %v69_v9 }
  0x39   :  { %383 = vmatpush3.bf16.msra.mxu0 %v380_v3  ;;  %377 = vmatprep.mubr.f32.mxu0 %v606_v11  ;;  %v163_v14 = vld [vmem:[#allocation6] sm:$0xff]  ;;  %v412_v15 = vpack.c.bf16 %v180_v13, %v179_v12  ;;  %v164_v16 = vld [vmem:[#allocation6 + $0x8] sm:$0xff]  ;;  %v181_v17 = vld [vmem:[#allocation6 + $0x90] sm:$0xff] }
  0x3a   :  { %385 = vmatprep.subr.bf16.mxu0 %v384_v5  ;;  %v182_v18 = vld [vmem:[#allocation6 + $0x98] sm:$0xff]  ;;  %v414_v19 = vpack.c.bf16 %v164_v16, %v163_v14  ;;  %v165_v21 = vld [vmem:[#allocation6 + $0x10] sm:$0xff]  ;;  %v183_v23 = vld [vmem:[#allocation6 + $0xa0] sm:$0xff] }
  0x3b   :  { %v416_v20 = vpack.c.bf16 %v182_v18, %v181_v17  ;;  %v166_v22 = vld [vmem:[#allocation6 + $0x18] sm:$0xff]  ;;  %413 = vmatprep.subr.bf16.mxu1 %v412_v15  ;;  %v184_v25 = vld [vmem:[#allocation6 + $0xa8] sm:$0xff]  ;;  %v71_v26 = vld [vmem:[#allocation4 + $0x40] sm:$0xff] }
  0x3c   :  { %v72_v27 = vld [vmem:[#allocation4 + $0x48] sm:$0xff]  ;;  %415 = vmatpush3.bf16.msra.mxu1 %v414_v19  ;;  %v418_v28 = vpack.c.bf16 %v166_v22, %v165_v21  ;;  %v420_v29 = vpack.c.bf16 %v184_v25, %v183_v23  ;;  %v167_v30 = vld [vmem:[#allocation6 + $0x20] sm:$0xff]  ;;  %v185_v32 = vld [vmem:[#allocation6 + $0xb0] sm:$0xff] }
  0x3d   :  { %387 = vmatpush3.bf16.msra.mxu0 %v384_v5  ;;  %417 = vmatprep.subr.bf16.mxu1 %v416_v20  ;;  %v168_v31 = vld [vmem:[#allocation6 + $0x28] sm:$0xff]  ;;  %v186_v33 = vld [vmem:[#allocation6 + $0xb8] sm:$0xff]  ;;  %v396_v34 = vpack.c.bf16 %v72_v27, %v71_v26  ;;  %v73_v35 = vld [vmem:[#allocation4 + $0x50] sm:$0xff] }
  0x3e   :  { %389 = vmatprep.subr.bf16.mxu0 %v388_v8  ;;  %v74_v36 = vld [vmem:[#allocation4 + $0x58] sm:$0xff]  ;;  %v422_v37 = vpack.c.bf16 %v168_v31, %v167_v30  ;;  %v424_v38 = vpack.c.bf16 %v186_v33, %v185_v32  ;;  %v169_v39 = vld [vmem:[#allocation6 + $0x30] sm:$0xff]  ;;  %v187_v41 = vld [vmem:[#allocation6 + $0xc0] sm:$0xff] }
  0x3f   :  { %v170_v40 = vld [vmem:[#allocation6 + $0x38] sm:$0xff]  ;;  %v188_v42 = vld [vmem:[#allocation6 + $0xc8] sm:$0xff]  ;;  %v400_v43 = vpack.c.bf16 %v74_v36, %v73_v35  ;;  %v75_v44 = vld [vmem:[#allocation4 + $0x60] sm:$0xff] }
  0x40   :  { %419 = vmatpush3.bf16.msra.mxu1 %v418_v28  ;;  %v76_v45 = vld [vmem:[#allocation4 + $0x68] sm:$0xff]  ;;  %v426_v46 = vpack.c.bf16 %v170_v40, %v169_v39  ;;  %v428_v47 = vpack.c.bf16 %v188_v42, %v187_v41  ;;  %v171_v48 = vld [vmem:[#allocation6 + $0x40] sm:$0xff]  ;;  %v189_v50 = vld [vmem:[#allocation6 + $0xd0] sm:$0xff] }
  0x41   :  { %391 = vmatpush3.bf16.msra.mxu0 %v388_v8  ;;  %421 = vmatprep.subr.bf16.mxu1 %v420_v29  ;;  %v172_v49 = vld [vmem:[#allocation6 + $0x48] sm:$0xff]  ;;  %v190_v51 = vld [vmem:[#allocation6 + $0xd8] sm:$0xff]  ;;  %v404_v52 = vpack.c.bf16 %v76_v45, %v75_v44  ;;  %v77_v53 = vld [vmem:[#allocation4 + $0x70] sm:$0xff] }
  0x42   :  { %393 = vmatprep.subr.bf16.mxu0 %v392_v24  ;;  %v78_v54 = vld [vmem:[#allocation4 + $0x78] sm:$0xff]  ;;  %v430_v55 = vpack.c.bf16 %v172_v49, %v171_v48  ;;  %v432_v56 = vpack.c.bf16 %v190_v51, %v189_v50  ;;  %v173_v57 = vld [vmem:[#allocation6 + $0x50] sm:$0xff]  ;;  %v191_v59 = vld [vmem:[#allocation6 + $0xe0] sm:$0xff] }
  0x43   :  { %v174_v58 = vld [vmem:[#allocation6 + $0x58] sm:$0xff]  ;;  %v192_v60 = vld [vmem:[#allocation6 + $0xe8] sm:$0xff]  ;;  %v408_v61 = vpack.c.bf16 %v78_v54, %v77_v53  ;;  %v175_v1 = vld [vmem:[#allocation6 + $0x60] sm:$0xff] }
  0x44   :  { %423 = vmatpush3.bf16.msra.mxu1 %v422_v37  ;;  %v434_v62 = vpack.c.bf16 %v174_v58, %v173_v57  ;;  %v436_v63 = vpack.c.bf16 %v192_v60, %v191_v59  ;;  %v62_v0 = vld [vmem:[#allocation2 + $0x8] sm:$0xff]  ;;  %v176_v2 = vld [vmem:[#allocation6 + $0x68] sm:$0xff]  ;;  %v193_v4 = vld [vmem:[#allocation6 + $0xf0] sm:$0xff] }
  0x45   :  { %395 = vmatpush3.bf16.msra.mxu0 %v392_v24  ;;  %425 = vmatprep.subr.bf16.mxu1 %v424_v38  ;;  %v438_v3 = vpack.c.bf16 %v176_v2, %v175_v1  ;;  %v194_v5 = vld [vmem:[#allocation6 + $0xf8] sm:$0xff]  ;;  %v177_v7 = vld [vmem:[#allocation6 + $0x70] sm:$0xff] }
  0x46   :  { %397 = vmatprep.subr.bf16.mxu0 %v396_v34  ;;  %v440_v6 = vpack.c.bf16 %v194_v5, %v193_v4  ;;  %v178_v8 = vld [vmem:[#allocation6 + $0x78] sm:$0xff]  ;;  %v287_v10 = vld [vmem:[%s624_s2] ss:$0 sm:$0xff] }
  0x47   :  { %v442_v9 = vpack.c.bf16 %v178_v8, %v177_v7  ;;  %v288_v19 = vld [vmem:[%s626_s4] ss:$0 sm:$0xff] }
  0x48   :  { %427 = vmatpush3.bf16.msra.mxu1 %v426_v46 }
  0x49   :  { %399 = vmatpush3.bf16.msra.mxu0 %v396_v34  ;;  %429 = vmatprep.subr.bf16.mxu1 %v428_v47 }
  0x4a   :  { %401 = vmatprep.subr.bf16.mxu0 %v400_v43 }
  0x4c   :  { %431 = vmatpush3.bf16.msra.mxu1 %v430_v55 }
  0x4d   :  { %403 = vmatpush3.bf16.msra.mxu0 %v400_v43  ;;  %433 = vmatprep.subr.bf16.mxu1 %v432_v56 }
  0x4e   :  { %405 = vmatprep.subr.bf16.mxu0 %v404_v52 }
  0x50   :  { %435 = vmatpush3.bf16.msra.mxu1 %v434_v62 }
  0x51   :  { %407 = vmatpush3.bf16.msra.mxu0 %v404_v52  ;;  %437 = vmatprep.subr.bf16.mxu1 %v436_v63 }
  0x52   :  { %409 = vmatprep.subr.bf16.mxu0 %v408_v61 }
  0x54   :  { %439 = vmatpush3.bf16.msra.mxu1 %v438_v3 }
  0x55   :  { %411 = vmatpush3.bf16.msra.mxu0 %v408_v61  ;;  %441 = vmatprep.subr.bf16.mxu1 %v440_v6 }
  0x58   :  { %378 = vmatmul.mubr.f32.vlgmr.msra.gmra.mrb[0].mxu0 %v62_v0  ;;  %443 = vmatpush3.bf16.msra.mxu1 %v442_v9 }
 0x12b   :  { %v379_v12 = vpop.f32.mrb[0].mxu0 }
 0x12c   :  { %v152_v13 = vpop.f32.mrb[1].mxu0  ;;  %v158_v14 = vadd.f32 %v379_v12, %v287_v10 }
 0x12d   :  { %v153_v15 = vadd.f32 %v287_v10, %v152_v13 }
 0x12e   :  { %v162_v17 = vmax.f32 %v158_v14, 0.0 }
 0x12f   :  { %v161_v16 = vmax.f32 %v153_v15, 0.0 }
 0x131   :  { %266 = vmatprep.mubr.f32.mxu1 %v161_v16 }
 0x132   :  { %267 = vmatmul.mubr.f32.vlgmr.msra.gmra.mrb[0].mxu1 %v606_v11 }
 0x133   :  { %271 = vmatprep.mubr.f32.mxu1 %v162_v17 }
 0x136   :  { %272 = vmatmul.mubr.f32.gmra.mrb[2].mxu1 %v62_v0 }
 0x205   :  { %v339_v18 = vpop.f32.mrb[0].mxu1 }
 0x206   :  { %v340_v20 = vpop.f32.mrb[1].mxu1 }
 0x207   :  { %v341_v21 = vadd.f32 %v340_v20, %v339_v18 }
 0x209   :  { %v269_v22 = vadd.f32 %v341_v21, %v288_v19  ;;  %v342_v23 = vpop.f32.mrb[2].mxu1 }
 0x20a   :  { %v343_v24 = vpop.f32.mrb[3].mxu1 }
 0x20b   :  { %v277_v25 = vmax.f32 %v269_v22, 0.0  ;;  %v344_v26 = vadd.f32 %v343_v24, %v342_v23 }
 0x20d   :  { %279 = vst [vmem:[%s627_s5] sm:$0xff] %v277_v25  ;;  %v274_v27 = vadd.f32 %v344_v26, %v288_v19 }
 0x20f   :  { %v278_v11 = vmax.f32 %v274_v27, 0.0 }
 0x211   :  { %280 = vst [vmem:[%s627_s5 + $0x8] sm:$0xff] %v278_v11 }
 0x212   :  { %285 = vsyncpa [#allocation3], 1 }
 0x213   :  { %286 = vsyncpa [#allocation5], 1 }

</bundles_post_ra>
